<compile_context>
chip_gen: v5e
topology: v5e:2x2
jax: 0.10.0
libtpu: 0.0.40
codegen_flags: <defaults>
</compile_context>

<pallas_src>
import math

import jax
import jax.numpy as jnp
import numpy as np
from jax import lax
from jax.experimental import pallas as pl
from jax.experimental.pallas import tpu as pltpu

B, S, HIDDEN, HEADS = 2, 8, 32, 4
D = HIDDEN // HEADS
BS = B * S
BH = B * HEADS
SCALED = True
LN_EPS = 1e-5
NEG_BIG = -1e15

# Row offsets inside the packed constants buffer (all multiples of 8 sublanes).
OFF_WK = 0                  # (HIDDEN, HIDDEN) : w_k.T / sqrt(D)
OFF_WV = OFF_WK + HIDDEN    # (HIDDEN, HIDDEN) : w_v.T
OFF_WF = OFF_WV + HIDDEN    # (HIDDEN, HIDDEN) : ff_final.weight.T
OFF_HS = OFF_WF + HIDDEN    # (HIDDEN, BH)     : tiled per-head-sum one-hot
OFF_HE = OFF_HS + HIDDEN    # (BH, HIDDEN)     : per-head expand one-hot
OFF_VEC = OFF_HE + 8        # (8, HIDDEN) rows : bk/sqrt(D), bv, bf, u, gamma, beta, 0, 0
OFF_SS = OFF_VEC + 8        # (B, BS)          : segment-sum one-hot
OFF_RBH = OFF_SS + 8        # (BS, HIDDEN)     : row batch id (float)
OFF_WBA = OFF_RBH + BS      # (BS, BH)         : 0 where same batch, -1e15 otherwise
OFF_RP = OFF_WBA + BS       # (BS, BH)         : position within sequence (float)
OFF_CB = OFF_RP + BS        # (BS, BH)         : column batch id (float)
PACK_ROWS = OFF_CB + BS     # = 216


def mha_direct_kernel(seq_total_ref,                   # SMEM (B,) int32
                      key_ref, query_ref, value_ref,   # (BS,H), (B,H), (BS,H)
                      pack_ref,                        # (PACK_ROWS, H) packed constants
                      out_ref):                        # (B,H)
    # ---- static, sublane-aligned windows into the packed constants (single DMA). ----
    wk_t = pack_ref[OFF_WK:OFF_WK + HIDDEN, :]          # (H, H), 1/sqrt(D) folded in
    wv_t = pack_ref[OFF_WV:OFF_WV + HIDDEN, :]          # (H, H)
    wf_t = pack_ref[OFF_WF:OFF_WF + HIDDEN, :]          # (H, H)
    head_sum = pack_ref[OFF_HS:OFF_HS + HIDDEN, :BH]    # (H, BH)
    head_expand = pack_ref[OFF_HE:OFF_HE + BH, :]       # (BH, H)
    vec = pack_ref[OFF_VEC:OFF_VEC + 8, :]              # (8, H) bias/affine rows
    seg_sum = pack_ref[OFF_SS:OFF_SS + B, :BS]          # (B, BS)
    row_batch_h = pack_ref[OFF_RBH:OFF_RBH + BS, :]     # (BS, H)  float batch id
    wrong_batch = pack_ref[OFF_WBA:OFF_WBA + BS, :BH]   # (BS, BH) 0 / -1e15
    row_pos = pack_ref[OFF_RP:OFF_RP + BS, :BH]         # (BS, BH) float position
    col_batch = pack_ref[OFF_CB:OFF_CB + BS, :BH]       # (BS, BH) float batch id
    bk, bv_row, bf = vec[0:1, :], vec[1:2, :], vec[2:3, :]
    u_row, gamma, beta = vec[3:4, :], vec[4:5, :], vec[5:6, :]

    # ---- K / V projections: two independent dots (no lane concat, no zero blocks);
    #      1/sqrt(D) score scale already folded into wk_t / bk. ----
    k_proj = jnp.dot(key_ref[...], wk_t, preferred_element_type=jnp.float32) + bk
    v_proj = jnp.dot(value_ref[...], wv_t, preferred_element_type=jnp.float32) + bv_row

    # ---- (query + u), replicated to one row per (batch, position) (pure VPU). ----
    qpu = query_ref[...] + u_row                                               # (B, H)
    qpu_rows = jnp.broadcast_to(qpu[0:1, :], (BS, HIDDEN))
    for b in range(1, B):                                                      # unrolled, B tiny
        qpu_rows = jnp.where(row_batch_h > (b - 0.5),
                             jnp.broadcast_to(qpu[b:b + 1, :], (BS, HIDDEN)),
                             qpu_rows)                                         # (BS, H)

    # ---- per-head dot over d, produced directly in the tiled (BS, B*HEADS) layout. ----
    scores = jnp.dot(k_proj * qpu_rows, head_sum,
                     preferred_element_type=jnp.float32)                       # (BS, BH)

    # ---- masking: wrong-batch columns and positions >= seq_total[batch] -> -1e15. ----
    limit = jnp.full((BS, BH), seq_total_ref[0], jnp.int32)
    for b in range(1, B):                                                      # unrolled
        limit = jnp.where(col_batch > (b - 0.5), seq_total_ref[b], limit)
    keep = row_pos.astype(jnp.int32) < limit
    scores = jnp.where(keep, scores + wrong_batch, NEG_BIG)

    # ---- softmax over the sequence axis (axis 0); masked entries underflow to 0.
    #      Exact divide: denominator is a single (1, BH) vector, approx buys nothing.
    #      (Assumes seq_total[b] >= 1, as the PyTorch reference implicitly does.) ----
    m = jnp.max(scores, axis=0, keepdims=True)
    e = jnp.exp(scores - m)
    attn = e / jnp.sum(e, axis=0, keepdims=True)                               # (BS, BH)
    # attention dropout is identity in eval mode.

    # ---- weighted value sum: spread head weights over hidden, segment-sum over s. ----
    attn_full = jnp.dot(attn, head_expand, preferred_element_type=jnp.float32)  # (BS, H)
    ctx = jnp.dot(seg_sum, attn_full * v_proj,
                  preferred_element_type=jnp.float32)                           # (B, H)

    # ---- ff_final (pre-transposed weight). ----
    res = jnp.dot(ctx, wf_t, preferred_element_type=jnp.float32) + bf           # (B, H)

    # ---- layer_postprocess 'an': LayerNorm(output + inp) with inp == output. ----
    res = res + res
    mean = jnp.mean(res, axis=-1, keepdims=True)
    var = jnp.mean((res - mean) ** 2, axis=-1, keepdims=True)
    out_ref[...] = (res - mean) * lax.rsqrt(var + LN_EPS) * gamma + beta


def pack_constants(params):
    """One-time, outside the per-call hot path: pre-transpose / pre-scale weights and
    bake every data-independent one-hot / mask constant into a single VMEM buffer."""
    wk, bk, wv, bv, u_flat, wf, bf, gamma, beta = [np.asarray(p, np.float32) for p in params]
    inv = (1.0 / math.sqrt(D)) if SCALED else 1.0

    pack = np.zeros((PACK_ROWS, HIDDEN), np.float32)
    pack[OFF_WK:OFF_WK + HIDDEN, :] = wk.T * inv
    pack[OFF_WV:OFF_WV + HIDDEN, :] = wv.T
    pack[OFF_WF:OFF_WF + HIDDEN, :] = wf.T

    hi = np.arange(HIDDEN)[:, None]
    col = np.arange(BH)[None, :]
    pack[OFF_HS:OFF_HS + HIDDEN, :BH] = (hi // D == col % HEADS).astype(np.float32)

    c = np.arange(BH)[:, None]
    hj = np.arange(HIDDEN)[None, :]
    pack[OFF_HE:OFF_HE + BH, :] = (c % HEADS == hj // D).astype(np.float32)

    pack[OFF_VEC + 0, :] = bk.reshape(-1) * inv
    pack[OFF_VEC + 1, :] = bv.reshape(-1)
    pack[OFF_VEC + 2, :] = bf.reshape(-1)
    pack[OFF_VEC + 3, :] = u_flat.reshape(-1)
    pack[OFF_VEC + 4, :] = gamma.reshape(-1)
    pack[OFF_VEC + 5, :] = beta.reshape(-1)

    r = np.arange(BS)
    pack[OFF_SS:OFF_SS + B, :BS] = (np.arange(B)[:, None] == (r[None, :] // S)).astype(np.float32)
    pack[OFF_RBH:OFF_RBH + BS, :] = np.broadcast_to(
        (r // S)[:, None].astype(np.float32), (BS, HIDDEN))

    rb = (r // S)[:, None]
    cb = (np.arange(BH) // HEADS)[None, :]
    pack[OFF_WBA:OFF_WBA + BS, :BH] = np.where(rb == cb, 0.0, NEG_BIG).astype(np.float32)
    pack[OFF_RP:OFF_RP + BS, :BH] = np.broadcast_to(
        (r % S)[:, None].astype(np.float32), (BS, BH))
    pack[OFF_CB:OFF_CB + BS, :BH] = np.broadcast_to(cb.astype(np.float32), (BS, BH))
    return jnp.asarray(pack)


@jax.jit
def mha_direct(key, query, value, seq_total, pack):
    # Only per-call work here: flatten (B,S,H)->(B*S,H) (layout no-op) and one pallas_call.
    key2d = key.reshape(B * S, HIDDEN)
    value2d = value.reshape(B * S, HIDDEN)

    vmem = lambda: pl.BlockSpec(memory_space=pltpu.MemorySpace.VMEM)
    smem = pl.BlockSpec(memory_space=pltpu.MemorySpace.SMEM)

    return pl.pallas_call(
        mha_direct_kernel,
        out_shape=jax.ShapeDtypeStruct((B, HIDDEN), jnp.float32),
        in_specs=[smem,                        # seq_total (scalars in SMEM)
                  vmem(), vmem(), vmem(),      # key2d, query, value2d
                  vmem()],                     # packed constants (single DMA)
        out_specs=vmem(),
    )(seq_total, key2d, query, value2d, pack)


def mha_direct_reference(key, query, value, seq_total, params):
    """Pure-JAX reference mirroring the PyTorch forward."""
    wk, bk, wv, bv, u_flat, wf, bf, gamma, beta = params
    k = key @ wk.T + bk                       # (B, S, HIDDEN)
    v = value @ wv.T + bv
    qpu = query + u_flat                      # (B, HIDDEN)
    kr = k.reshape(B, S, HEADS, D)
    vr = v.reshape(B, S, HEADS, D)
    qr = qpu.reshape(B, HEADS, D)
    scores = jnp.einsum("bshd,bhd->bhs", kr, qr)
    if SCALED:
        scores = scores / math.sqrt(D)
    mask = jnp.arange(S)[None, :] < seq_total[:, None]        # (B, S)
    scores = jnp.where(mask[:, None, :], scores, NEG_BIG)
    attn = jax.nn.softmax(scores, axis=-1)
    ctx = jnp.einsum("bhs,bshd->bhd", attn, vr).reshape(B, HIDDEN)
    res = ctx @ wf.T + bf
    res = 2.0 * res
    mean = jnp.mean(res, axis=-1, keepdims=True)
    var = jnp.mean((res - mean) ** 2, axis=-1, keepdims=True)
    return (res - mean) * lax.rsqrt(var + LN_EPS) * gamma + beta


if __name__ == "__main__":
    root = jax.random.PRNGKey(0)
    ks = jax.random.split(root, 12)
    sc = 0.1
    wk = jax.random.normal(ks[0], (HIDDEN, HIDDEN), jnp.float32) * sc
    bk = jax.random.normal(ks[1], (1, HIDDEN), jnp.float32) * sc
    wv = jax.random.normal(ks[2], (HIDDEN, HIDDEN), jnp.float32) * sc
    bv = jax.random.normal(ks[3], (1, HIDDEN), jnp.float32) * sc
    # u is zeros in the PyTorch __init__; use a small nonzero init so the per-head
    # bias path is actually exercised.  (HEADS, D) row-major flattened.
    u_flat = jax.random.normal(ks[4], (1, HIDDEN), jnp.float32) * sc
    wf = jax.random.normal(ks[5], (HIDDEN, HIDDEN), jnp.float32) * sc
    bf = jax.random.normal(ks[6], (1, HIDDEN), jnp.float32) * sc
    gamma = jnp.ones((1, HIDDEN), jnp.float32)
    beta = jnp.zeros((1, HIDDEN), jnp.float32)
    params = (wk, bk, wv, bv, u_flat, wf, bf, gamma, beta)

    # One-time parameter packing (NOT in the per-call jitted path).
    pack = pack_constants(params)

    key_in = jax.random.normal(ks[7], (B, S, HIDDEN), jnp.float32)
    query_in = jax.random.normal(ks[8], (B, HIDDEN), jnp.float32)
    value_in = jax.random.normal(ks[9], (B, S, HIDDEN), jnp.float32)
    seq_len = jnp.array([5, 7], dtype=jnp.int32)
    lex_num = 1
    # Like PyTorch (max(seq_len + lex_num) equals S for the mask broadcast); every
    # batch must have seq_total[b] >= 1.
    seq_total = seq_len + lex_num

    out = mha_direct(key_in, query_in, value_in, seq_total, pack)
    out = jax.block_until_ready(out)

    ref = mha_direct_reference(key_in, query_in, value_in, seq_total, params)
    np.testing.assert_allclose(np.asarray(out), np.asarray(ref), atol=1e-4, rtol=1e-4)
    print("KERNEL_OK")
</pallas_src>

<mosaic_0001>
module attributes {stable_mosaic.version = 11 : i64} {
  func.func @mha_direct_kernel(%arg0: memref<2xi32, #tpu.memory_space<smem>>, %arg1: memref<16x32xf32, #tpu.memory_space<vmem>>, %arg2: memref<2x32xf32, #tpu.memory_space<vmem>>, %arg3: memref<16x32xf32, #tpu.memory_space<vmem>>, %arg4: memref<216x32xf32, #tpu.memory_space<vmem>>, %arg5: memref<2x32xf32, #tpu.memory_space<vmem>>) attributes {dimension_semantics = [], scalar_prefetch = 0 : i64, scratch_operands = 0 : i64, tpu.core_type = #tpu.core_type<tc>} {
    %c0 = arith.constant 0 : index
    %c0_0 = arith.constant 0 : index
    %0 = vector.load %arg4[%c0, %c0_0] : memref<216x32xf32, #tpu.memory_space<vmem>>, vector<32x32xf32>
    %c32 = arith.constant 32 : index
    %c0_1 = arith.constant 0 : index
    %1 = vector.load %arg4[%c32, %c0_1] : memref<216x32xf32, #tpu.memory_space<vmem>>, vector<32x32xf32>
    %c64 = arith.constant 64 : index
    %c0_2 = arith.constant 0 : index
    %2 = vector.load %arg4[%c64, %c0_2] : memref<216x32xf32, #tpu.memory_space<vmem>>, vector<32x32xf32>
    %c96 = arith.constant 96 : index
    %c0_3 = arith.constant 0 : index
    %3 = vector.load %arg4[%c96, %c0_3] : memref<216x32xf32, #tpu.memory_space<vmem>>, vector<32x8xf32>
    %c128 = arith.constant 128 : index
    %c0_4 = arith.constant 0 : index
    %4 = vector.load %arg4[%c128, %c0_4] : memref<216x32xf32, #tpu.memory_space<vmem>>, vector<8x32xf32>
    %c136 = arith.constant 136 : index
    %c0_5 = arith.constant 0 : index
    %5 = vector.load %arg4[%c136, %c0_5] : memref<216x32xf32, #tpu.memory_space<vmem>>, vector<8x32xf32>
    %c144 = arith.constant 144 : index
    %c0_6 = arith.constant 0 : index
    %6 = vector.load %arg4[%c144, %c0_6] : memref<216x32xf32, #tpu.memory_space<vmem>>, vector<2x16xf32>
    %c152 = arith.constant 152 : index
    %c0_7 = arith.constant 0 : index
    %7 = vector.load %arg4[%c152, %c0_7] : memref<216x32xf32, #tpu.memory_space<vmem>>, vector<16x32xf32>
    %c168 = arith.constant 168 : index
    %c0_8 = arith.constant 0 : index
    %8 = vector.load %arg4[%c168, %c0_8] : memref<216x32xf32, #tpu.memory_space<vmem>>, vector<16x8xf32>
    %c184 = arith.constant 184 : index
    %c0_9 = arith.constant 0 : index
    %9 = vector.load %arg4[%c184, %c0_9] : memref<216x32xf32, #tpu.memory_space<vmem>>, vector<16x8xf32>
    %c200 = arith.constant 200 : index
    %c0_10 = arith.constant 0 : index
    %10 = vector.load %arg4[%c200, %c0_10] : memref<216x32xf32, #tpu.memory_space<vmem>>, vector<16x8xf32>
    %11 = vector.extract_strided_slice %5 {offsets = [0, 0], sizes = [1, 32], strides = [1, 1]} : vector<8x32xf32> to vector<1x32xf32>
    %12 = vector.extract_strided_slice %5 {offsets = [1, 0], sizes = [1, 32], strides = [1, 1]} : vector<8x32xf32> to vector<1x32xf32>
    %13 = vector.extract_strided_slice %5 {offsets = [2, 0], sizes = [1, 32], strides = [1, 1]} : vector<8x32xf32> to vector<1x32xf32>
    %14 = vector.extract_strided_slice %5 {offsets = [3, 0], sizes = [1, 32], strides = [1, 1]} : vector<8x32xf32> to vector<1x32xf32>
    %15 = vector.extract_strided_slice %5 {offsets = [4, 0], sizes = [1, 32], strides = [1, 1]} : vector<8x32xf32> to vector<1x32xf32>
    %16 = vector.extract_strided_slice %5 {offsets = [5, 0], sizes = [1, 32], strides = [1, 1]} : vector<8x32xf32> to vector<1x32xf32>
    %c0_11 = arith.constant 0 : index
    %c0_12 = arith.constant 0 : index
    %17 = vector.load %arg1[%c0_11, %c0_12] : memref<16x32xf32, #tpu.memory_space<vmem>>, vector<16x32xf32>
    %cst = arith.constant dense<0.000000e+00> : vector<16x32xf32>
    %18 = tpu.matmul %17, %0, %cst {dimension_numbers = #tpu.dot_dimension_numbers<[1], [0], [0], [1], [0, 0, 1, 1], [], []>} : vector<16x32xf32>, vector<32x32xf32>, vector<16x32xf32> -> vector<16x32xf32>
    %19 = vector.broadcast %11 : vector<1x32xf32> to vector<16x32xf32>
    %20 = arith.addf %18, %19 : vector<16x32xf32>
    %c0_13 = arith.constant 0 : index
    %c0_14 = arith.constant 0 : index
    %21 = vector.load %arg3[%c0_13, %c0_14] : memref<16x32xf32, #tpu.memory_space<vmem>>, vector<16x32xf32>
    %cst_15 = arith.constant dense<0.000000e+00> : vector<16x32xf32>
    %22 = tpu.matmul %21, %1, %cst_15 {dimension_numbers = #tpu.dot_dimension_numbers<[1], [0], [0], [1], [0, 0, 1, 1], [], []>} : vector<16x32xf32>, vector<32x32xf32>, vector<16x32xf32> -> vector<16x32xf32>
    %23 = vector.broadcast %12 : vector<1x32xf32> to vector<16x32xf32>
    %24 = arith.addf %22, %23 : vector<16x32xf32>
    %c0_16 = arith.constant 0 : index
    %c0_17 = arith.constant 0 : index
    %25 = vector.load %arg2[%c0_16, %c0_17] : memref<2x32xf32, #tpu.memory_space<vmem>>, vector<2x32xf32>
    %26 = vector.broadcast %14 : vector<1x32xf32> to vector<2x32xf32>
    %27 = arith.addf %25, %26 : vector<2x32xf32>
    %28 = vector.extract_strided_slice %27 {offsets = [0, 0], sizes = [1, 32], strides = [1, 1]} : vector<2x32xf32> to vector<1x32xf32>
    %29 = vector.shape_cast %28 : vector<1x32xf32> to vector<1x32xf32>
    %30 = vector.broadcast %29 : vector<1x32xf32> to vector<16x32xf32>
    %cst_18 = arith.constant 5.000000e-01 : f32
    %31 = vector.broadcast %cst_18 : f32 to vector<16x32xf32>
    %32 = arith.cmpf ogt, %7, %31 : vector<16x32xf32>
    %33 = vector.extract_strided_slice %27 {offsets = [1, 0], sizes = [1, 32], strides = [1, 1]} : vector<2x32xf32> to vector<1x32xf32>
    %34 = vector.shape_cast %33 : vector<1x32xf32> to vector<1x32xf32>
    %35 = vector.broadcast %34 : vector<1x32xf32> to vector<16x32xf32>
    %36 = arith.select %32, %35, %30 : vector<16x32xi1>, vector<16x32xf32>
    %37 = arith.mulf %20, %36 : vector<16x32xf32>
    %cst_19 = arith.constant dense<0.000000e+00> : vector<16x8xf32>
    %38 = tpu.matmul %37, %3, %cst_19 {dimension_numbers = #tpu.dot_dimension_numbers<[1], [0], [0], [1], [0, 0, 1, 1], [], []>} : vector<16x32xf32>, vector<32x8xf32>, vector<16x8xf32> -> vector<16x8xf32>
    %c0_20 = arith.constant 0 : index
    %39 = memref.load %arg0[%c0_20] : memref<2xi32, #tpu.memory_space<smem>>
    %40 = vector.broadcast %39 : i32 to vector<16x8xi32>
    %cst_21 = arith.constant 5.000000e-01 : f32
    %41 = vector.broadcast %cst_21 : f32 to vector<16x8xf32>
    %42 = arith.cmpf ogt, %10, %41 : vector<16x8xf32>
    %c1 = arith.constant 1 : index
    %43 = memref.load %arg0[%c1] : memref<2xi32, #tpu.memory_space<smem>>
    %44 = vector.broadcast %43 : i32 to vector<16x8xi32>
    %45 = arith.select %42, %44, %40 : vector<16x8xi1>, vector<16x8xi32>
    %46 = arith.fptosi %9 : vector<16x8xf32> to vector<16x8xi32>
    %47 = arith.cmpi slt, %46, %45 : vector<16x8xi32>
    %48 = arith.addf %38, %8 : vector<16x8xf32>
    %cst_22 = arith.constant -9.99999986E+14 : f32
    %49 = vector.broadcast %cst_22 : f32 to vector<16x8xf32>
    %50 = arith.select %47, %48, %49 : vector<16x8xi1>, vector<16x8xf32>
    %cst_23 = arith.constant dense<0xFF800000> : vector<8xf32>
    %51 = vector.multi_reduction <maximumf>, %50, %cst_23 [0] : vector<16x8xf32> to vector<8xf32>
    %52 = vector.shape_cast %51 : vector<8xf32> to vector<1x8xf32>
    %53 = vector.broadcast %52 : vector<1x8xf32> to vector<16x8xf32>
    %54 = arith.subf %50, %53 : vector<16x8xf32>
    %55 = math.exp %54 : vector<16x8xf32>
    %cst_24 = arith.constant dense<0.000000e+00> : vector<8xf32>
    %56 = vector.multi_reduction <add>, %55, %cst_24 [0] : vector<16x8xf32> to vector<8xf32>
    %57 = vector.shape_cast %56 : vector<8xf32> to vector<1x8xf32>
    %58 = vector.broadcast %57 : vector<1x8xf32> to vector<16x8xf32>
    %59 = arith.divf %55, %58 : vector<16x8xf32>
    %cst_25 = arith.constant dense<0.000000e+00> : vector<16x32xf32>
    %60 = tpu.matmul %59, %4, %cst_25 {dimension_numbers = #tpu.dot_dimension_numbers<[1], [0], [0], [1], [0, 0, 1, 1], [], []>} : vector<16x8xf32>, vector<8x32xf32>, vector<16x32xf32> -> vector<16x32xf32>
    %61 = arith.mulf %60, %24 : vector<16x32xf32>
    %cst_26 = arith.constant dense<0.000000e+00> : vector<2x32xf32>
    %62 = tpu.matmul %6, %61, %cst_26 {dimension_numbers = #tpu.dot_dimension_numbers<[1], [0], [0], [1], [0, 0, 1, 1], [], []>} : vector<2x16xf32>, vector<16x32xf32>, vector<2x32xf32> -> vector<2x32xf32>
    %cst_27 = arith.constant dense<0.000000e+00> : vector<2x32xf32>
    %63 = tpu.matmul %62, %2, %cst_27 {dimension_numbers = #tpu.dot_dimension_numbers<[1], [0], [0], [1], [0, 0, 1, 1], [], []>} : vector<2x32xf32>, vector<32x32xf32>, vector<2x32xf32> -> vector<2x32xf32>
    %64 = vector.broadcast %13 : vector<1x32xf32> to vector<2x32xf32>
    %65 = arith.addf %63, %64 : vector<2x32xf32>
    %66 = arith.addf %65, %65 : vector<2x32xf32>
    %cst_28 = arith.constant dense<0.000000e+00> : vector<2xf32>
    %67 = vector.multi_reduction <add>, %66, %cst_28 [1] : vector<2x32xf32> to vector<2xf32>
    %68 = vector.shape_cast %67 : vector<2xf32> to vector<2x1xf32>
    %cst_29 = arith.constant 3.200000e+01 : f32
    %69 = vector.broadcast %cst_29 : f32 to vector<2x1xf32>
    %70 = arith.divf %68, %69 : vector<2x1xf32>
    %71 = vector.broadcast %70 : vector<2x1xf32> to vector<2x32xf32>
    %72 = arith.subf %66, %71 : vector<2x32xf32>
    %73 = arith.mulf %72, %72 : vector<2x32xf32>
    %cst_30 = arith.constant dense<0.000000e+00> : vector<2xf32>
    %74 = vector.multi_reduction <add>, %73, %cst_30 [1] : vector<2x32xf32> to vector<2xf32>
    %75 = vector.shape_cast %74 : vector<2xf32> to vector<2x1xf32>
    %cst_31 = arith.constant 3.200000e+01 : f32
    %76 = vector.broadcast %cst_31 : f32 to vector<2x1xf32>
    %77 = arith.divf %75, %76 : vector<2x1xf32>
    %78 = vector.broadcast %70 : vector<2x1xf32> to vector<2x32xf32>
    %79 = arith.subf %66, %78 : vector<2x32xf32>
    %cst_32 = arith.constant 9.99999974E-6 : f32
    %80 = vector.broadcast %cst_32 : f32 to vector<2x1xf32>
    %81 = arith.addf %77, %80 : vector<2x1xf32>
    %82 = math.rsqrt %81 : vector<2x1xf32>
    %83 = vector.broadcast %82 : vector<2x1xf32> to vector<2x32xf32>
    %84 = arith.mulf %79, %83 : vector<2x32xf32>
    %85 = vector.broadcast %15 : vector<1x32xf32> to vector<2x32xf32>
    %86 = arith.mulf %84, %85 : vector<2x32xf32>
    %87 = vector.broadcast %16 : vector<1x32xf32> to vector<2x32xf32>
    %88 = arith.addf %86, %87 : vector<2x32xf32>
    %c0_33 = arith.constant 0 : index
    %c0_34 = arith.constant 0 : index
    %89 = vector.load %arg5[%c0_33, %c0_34] : memref<2x32xf32, #tpu.memory_space<vmem>>, vector<2x32xf32>
    tpu.vector_store %arg5[%c0_33, %c0_34], %88 {strides = array<i32>} : memref<2x32xf32, #tpu.memory_space<vmem>>, vector<2x32xf32>,
    return
  }
}

</mosaic_0001>

<bundles_post_ra>
// kernel: mha_direct.1
= control target key start
LH: loop header
LB: loop body
LE: loop exit
PB: predicated region body
PF: predicated region fallthrough
CT: control target
= control target key end

     0   :  { %10 = vsyncpa [#allocation4], 0  ;;  %s586_s0 = inlined_call_operand.vmem [shape: s32[2], index: 0, kind: input, shape index: {}]   ;;  %s587_s1 = inlined_call_operand.vmem [shape: f32[16,32], index: 1, kind: input, shape index: {}]   ;;  %s588_s2 = inlined_call_operand.vmem [shape: f32[2,32], index: 2, kind: input, shape index: {}]   ;;  %s589_s3 = inlined_call_operand.vmem [shape: f32[16,32], index: 3, kind: input, shape index: {}]   ;;  %s590_s4 = inlined_call_operand.vmem [shape: f32[216,32], index: 4, kind: input, shape index: {}]   ;;  %s591_s5 = inlined_call_operand.hbm [shape: f32[2,32], index: 5, kind: output, shape index: {}]  }
   0x1   :  { %11 = vsyncpa [#allocation3], 0  ;;  %s17_s20 = sshll.u32 %s586_s0, 4  ;;  %s427_s21 = smov [#allocation2]   ;;  %s18_s20 = int_to_ptr.vmem [resolvable:$true] %s17_s20 }
   0x2   :  { %20 = dma.vmem_to_smem %s18_s20, 16, %s427_s21, [#allocation4]  }
   0x3   :  { %423 = dma.done.wait [#allocation4], 16  }
   0x4   :  { %424 = vsyncadd [#allocation4], 4294967280 }
   0x5   :  { %33 = sfence }
   0x6   :  { %v37_v0 = vld [vmem:[%s590_s4 + $0x18] sm:$0xff]  ;;  %v36_v1 = vld [vmem:[%s590_s4 + $0x10] sm:$0xff]  ;;  %v35_v2 = vld [vmem:[%s590_s4 + $0x8] sm:$0xff]  ;;  %vm64_vm0 = vcmask 261120   ;;  %s357_s25 = sld [smem:[#allocation2 + $0x1]]  ;;  %vm180_vm9 = vcmask 64512  }
   0x7   :  { %83 = vmatpush.msra.mxu0 %v37_v0  ;;  %v49_v3 = vld [vmem:[%s590_s4 + $0x78] sm:$0xff]  ;;  %v34_v4 = vld [vmem:[%s590_s4] sm:$0xff]  ;;  %v62_v6 = vld [vmem:[%s587_s1 + $0x8] sm:$0xff]  ;;  %vm252_vm14 = vcmask 130048   ;;  %vm301_vm15 = vcmask 254976   ;;  %s343_s8 = sshll.u32 %s591_s5, 4  ;;  %s344_s8 = int_to_ptr.hbm [resolvable:$true] %s343_s8 }
   0x8   :  { %167 = vmatpush.msra.mxu2 %v49_v3  ;;  %v61_v5 = vld [vmem:[%s587_s1] sm:$0xff]  ;;  %v48_v7 = vld [vmem:[%s590_s4 + $0x70] sm:$0xff]  ;;  %v47_v8 = vld [vmem:[%s590_s4 + $0x68] sm:$0xff] }
   0x9   :  { %84 = vmatpush.msra.mxu0 %v36_v1  ;;  %v46_v9 = vld [vmem:[%s590_s4 + $0x60] sm:$0xff]  ;;  %v498_v10 = vld [vmem:[%s590_s4 + $0x88] sm:$0xff]  ;;  %v53_v14 = vld [vmem:[%s590_s4 + $0x98] sm:$0xff] }
   0xa   :  { %168 = vmatpush.msra.mxu2 %v48_v7  ;;  %v127_v11 = vperm.slane %v498_v10, 3  ;;  %v126_v12 = vld [vmem:[%s588_s2] sm:$0x3]  ;;  %v63_v17 = vperm.slane %v498_v10, 0  ;;  %vm130_vm1 = vcmp.gt.f32.partialorder %v53_v14, 0.5  ;;  %s137_s2 = sld [smem:[#allocation2]] }
   0xb   :  { %85 = vmatpush.msra.mxu0 %v35_v2  ;;  %v54_v21 = vld [vmem:[%s590_s4 + $0xa0] sm:$0xff]  ;;  %v57_v27 = vld [vmem:[%s590_s4 + $0xb8] sm:$0xff]  ;;  %v59_v31 = vld [vmem:[%s590_s4 + $0xc8] sm:$0xff] }
   0xc   :  { %169 = vmatpush.msra.mxu2 %v47_v8  ;;  %v128_v13 = vadd.f32 %v127_v11, %v126_v12  ;;  %vm131_vm2 = vcmp.gt.f32.partialorder %v54_v21, 0.5  ;;  %v58_v28 = vld [vmem:[%s590_s4 + $0xc0] sm:$0xff]  ;;  %v365_v29 = vceil.f32 %v57_v27  ;;  %v366_v30 = vfloor.f32 %v57_v27  ;;  %v60_v35 = vld [vmem:[%s590_s4 + $0xd0] sm:$0xff]  ;;  %v55_v40 = vld [vmem:[%s590_s4 + $0xa8] sm:$0xff] }
   0xd   :  { %86 = vmatpush.msra.mxu0 %v34_v4  ;;  %vm364_vm3 = vcmp.lt.s32.totalorder %v57_v27, 0  ;;  %v370_v32 = vceil.f32 %v58_v28  ;;  %v371_v33 = vfloor.f32 %v58_v28  ;;  %vm369_vm4 = vcmp.lt.s32.totalorder %v58_v28, 0  ;;  %v56_v46 = vld [vmem:[%s590_s4 + $0xb0] sm:$0xff]  ;;  %v41_v58 = vld [vmem:[%s590_s4 + $0x38] sm:$0xff]  ;;  %v50_v60 = vld [vmem:[%s590_s4 + $0x80] sm:$0xff] }
   0xe   :  { %353 = vmatmul.msk.f32.vlgmr.msra.gmra.mxu0 %vm64_vm0, %v61_v5  ;;  %170 = vmatpush.msra.mxu2 %v46_v9  ;;  %v129_v15 = vperm.slane %v128_v13, 0  ;;  %v132_v16 = vperm.slane %v128_v13, 1  ;;  %v367_v34 = vsel %vm364_vm3, %v365_v29, %v366_v30  ;;  %vm139_vm5 = vcmp.gt.f32.partialorder %v59_v31, 0.5  ;;  %v40_v59 = vld [vmem:[%s590_s4 + $0x30] sm:$0xff]  ;;  %v39_v8 = vld [vmem:[%s590_s4 + $0x28] sm:$0xff]  ;;  %v38_v9 = vld [vmem:[%s590_s4 + $0x20] sm:$0xff] }
   0xf   :  { %v142_v37 = vstv %s357_s25  ;;  %v372_v39 = vsel %vm369_vm4, %v370_v32, %v371_v33  ;;  %v368_v41 = vcvt.f32.s32 %v367_v34  ;;  %vm140_vm6 = vcmp.gt.f32.partialorder %v60_v35, 0.5  ;;  %115 = vmatpush.msra.mxu1 %v41_v58  ;;  %242 = vmatpush.msra.mxu3 %v50_v60  ;;  %v94_v12 = vld [vmem:[%s589_s3] sm:$0xff]  ;;  %v45_v31 = vld [vmem:[%s590_s4 + $0x58] sm:$0xff]  ;;  %v44_v32 = vld [vmem:[%s590_s4 + $0x50] sm:$0xff] }
  0x10   :  { %v133_v19 = vsel %vm130_vm1, %v132_v16, %v129_v15  ;;  %v134_v24 = vsel %vm131_vm2, %v132_v16, %v129_v15  ;;  %v138_v36 = vstv %s137_s2  ;;  %v373_v43 = vcvt.f32.s32 %v372_v39  ;;  %292 = vmatpush.msrb.mxu0 %v45_v31  ;;  %v43_v33 = vld [vmem:[%s590_s4 + $0x48] sm:$0xff] }
  0x11   :  { %v143_v42 = vsel %vm139_vm5, %v142_v37, %v138_v36  ;;  %v144_v45 = vsel %vm140_vm6, %v142_v37, %v138_v36  ;;  %116 = vmatpush.msra.mxu1 %v40_v59  ;;  %v96_v37 = vperm.slane %v498_v10, 1 }
  0x12   :  { %vm147_vm7 = vcmp.lt.s32.totalorder %v368_v41, %v143_v42  ;;  %vm148_vm8 = vcmp.lt.s32.totalorder %v373_v43, %v144_v45  ;;  %293 = vmatpush.msrb.mxu0 %v44_v32  ;;  %v52_v43 = vld [vmem:[%s590_s4 + $0x90] sm:$0x3] }
  0x13   :  { %117 = vmatpush.msra.mxu1 %v39_v8  ;;  %v331_v8 = vperm.slane %v498_v10, 4 }
  0x14   :  { %294 = vmatpush.msrb.mxu0 %v43_v33 }
  0x15   :  { %118 = vmatpush.msra.mxu1 %v38_v9 }
  0x16   :  { %354 = vmatmul.msk.f32.gmra.mxu0 %vm64_vm0, %v62_v6  ;;  %355 = vmatmul.msk.f32.vlgmr.msra.gmra.mxu1 %vm64_vm0, %v94_v12  ;;  %v333_v12 = vperm.slane %v498_v10, 5 }
  0x8b   :  { %v88_v18 = vpop.f32.mrf.mxu0 }
  0x8c   :  { %v89_v20 = vadd.f32 %v88_v18, %v63_v17 }
  0x8e   :  { %v135_v22 = vmul.f32 %v133_v19, %v89_v20 }
  0x90   :  { %358 = vmatmul.msk.f32.vlgmr.msra.gmra.mxu2 %vm64_vm0, %v135_v22 }
  0x93   :  { %v91_v23 = vpop.f32.mrf.mxu0  ;;  %v120_v34 = vpop.f32.mrf.mxu1 }
  0x94   :  { %v92_v25 = vadd.f32 %v91_v23, %v63_v17  ;;  %v95_v17 = vld [vmem:[%s589_s3 + $0x8] sm:$0xff]  ;;  %v121_v39 = vadd.f32 %v120_v34, %v96_v37 }
  0x95   :  { %356 = vmatmul.msk.f32.gmra.mxu1 %vm64_vm0, %v95_v17 }
  0x96   :  { %v136_v26 = vmul.f32 %v134_v24, %v92_v25 }
  0x98   :  { %359 = vmatmul.msk.f32.gmra.mxu2 %vm64_vm0, %v136_v26 }
 0x112   :  { %v123_v36 = vpop.f32.mrf.mxu1 }
 0x113   :  { %v172_v38 = vpop.f32.mrf.mxu2 }
 0x114   :  { %v173_v44 = vadd.f32 %v172_v38, %v55_v40  ;;  %v124_v38 = vadd.f32 %v123_v36, %v96_v37 }
 0x116   :  { %v178_v48 = vsel %vm147_vm7, %v173_v44, -1e+15  ;;  %v42_v44 = vld [vmem:[%s590_s4 + $0x40] sm:$0xff]  ;;  %s429_s4 = smov [#allocation5]  }
 0x117   :  { %v181_v51 = vsel %vm180_vm9, %v178_v48, -inf  ;;  %295 = vmatpush.msrb.mxu0 %v42_v44  ;;  %s341_s30 = sshll.u32 %s429_s4, 4  ;;  %s342_s30 = int_to_ptr.vmem [resolvable:$true] %s341_s30 }
 0x11b   :  { %v175_v47 = vpop.f32.mrf.mxu2 }
 0x11c   :  { %v176_v49 = vadd.f32 %v175_v47, %v56_v46  ;;  %v276_v46 = vperm.slane %v498_v10, 2 }
 0x11e   :  { %v179_v50 = vsel %vm148_vm8, %v176_v49, -1e+15 }
 0x11f   :  { %v182_v52 = vsel %vm180_vm9, %v179_v50, -inf }
 0x120   :  { %v183_v53 = vmax.f32 %v181_v51, %v182_v52  ;;  %v428_v51 = vmov 32.0  }
 0x122   :  { %v184_v54 = vrot.slane %v183_v53, 4 }
 0x124   :  { %v185_v55 = vmax.f32 %v183_v53, %v184_v54 }
 0x126   :  { %v186_v56 = vrot.slane %v185_v55, 2 }
 0x128   :  { %v187_v57 = vmax.f32 %v185_v55, %v186_v56 }
 0x12a   :  { %v188_v61 = vrot.slane %v187_v57, 1 }
 0x12c   :  { %v189_v62 = vmax.f32 %v187_v57, %v188_v61 }
 0x12e   :  { %v190_v63 = vsub.f32 %v178_v48, %v189_v62  ;;  %v191_v0 = vsub.f32 %v179_v50, %v189_v62 }
 0x130   :  { %v192_v1 = vmul.f32 1.442695, %v190_v63  ;;  %v194_v2 = vmul.f32 1.442695, %v191_v0 }
 0x132   :  { %377 = vpow2.f32 %v192_v1 }
 0x133   :  { %379 = vpow2.f32 %v194_v2 }
 0x138   :  { %v378_v3 = vpop.eup %377 }
 0x139   :  { %v380_v4 = vpop.eup %379  ;;  %v196_v5 = vsel %vm180_vm9, %v378_v3, 0.0 }
 0x13a   :  { %v197_v6 = vsel %vm180_vm9, %v380_v4, 0.0 }
 0x13b   :  { %v198_v7 = vadd.f32 %v197_v6, %v196_v5 }
 0x13d   :  { %v199_v11 = vrot.slane %v198_v7, 4 }
 0x13f   :  { %v200_v13 = vadd.f32 %v199_v11, %v198_v7 }
 0x141   :  { %v201_v14 = vrot.slane %v200_v13, 2 }
 0x143   :  { %v202_v15 = vadd.f32 %v201_v14, %v200_v13 }
 0x145   :  { %v203_v16 = vrot.slane %v202_v15, 1 }
 0x147   :  { %v204_v18 = vadd.f32 %v203_v16, %v202_v15 }
 0x149   :  { %381 = vrcp.f32 %v204_v18  ;;  %v216_v22 = vand.u32 2147483648, %v204_v18  ;;  %v214_v24 = vand.u32 2147483647, %v204_v18  ;;  %vm210_vm11 = vweird.f32 %v204_v18 }
 0x14a   :  { %383 = vrcp.f32 %v428_v51 }
 0x14b   :  { %v217_v26 = vor.u32 1.1754944e-38, %v216_v22  ;;  %vm215_vm13 = vcmp.eq.f32.partialorder %v214_v24, 8.507059e+37 }
 0x14f   :  { %v382_v19 = vpop.eup %381 }
 0x150   :  { %v206_v20 = vmul.f32 %v382_v19, %v204_v18  ;;  %vm211_vm10 = vweird.f32 %v382_v19  ;;  %v384_v52 = vpop.eup %383 }
 0x151   :  { %vm212_vm12 = vmor %vm210_vm11, %vm211_vm10  ;;  %v306_v53 = vmul.f32 32.0, %v384_v52  ;;  %vm310_vm1 = vweird.f32 %v384_v52 }
 0x152   :  { %v207_v21 = vsub.f32 1.0, %v206_v20 }
 0x153   :  { %v307_v54 = vsub.f32 1.0, %v306_v53 }
 0x154   :  { %v208_v23 = vmul.f32 %v382_v19, %v207_v21 }
 0x155   :  { %v308_v55 = vmul.f32 %v384_v52, %v307_v54 }
 0x156   :  { %v209_v25 = vadd.f32 %v382_v19, %v208_v23 }
 0x157   :  { %v309_v56 = vadd.f32 %v384_v52, %v308_v55 }
 0x158   :  { %v213_v27 = vsel %vm212_vm12, %v382_v19, %v209_v25 }
 0x159   :  { %v218_v28 = vsel %vm215_vm13, %v217_v26, %v213_v27  ;;  %v311_v57 = vsel %vm310_vm1, %v384_v52, %v309_v56 }
 0x15a   :  { %v219_v29 = vmul.f32 %v378_v3, %v218_v28  ;;  %v220_v30 = vmul.f32 %v380_v4, %v218_v28 }
 0x15c   :  { %360 = vmatmul.msk.f32.vlgmr.msra.gmra.mxu3 %vm180_vm9, %v219_v29 }
 0x164   :  { %361 = vmatmul.msk.f32.gmra.mxu3 %vm180_vm9, %v220_v30 }
 0x1df   :  { %v244_v35 = vpop.f32.mrf.mxu3 }
 0x1e0   :  { %v250_v42 = vmul.f32 %v244_v35, %v121_v39 }
 0x1e7   :  { %v247_v40 = vpop.f32.mrf.mxu3 }
 0x1e8   :  { %v251_v41 = vmul.f32 %v247_v40, %v124_v38 }
 0x1ea   :  { %270 = vmatpush.msrb.mxu3 %v251_v41 }
 0x1ec   :  { %271 = vmatpush.msrb.mxu3 %v250_v42 }
 0x1ed   :  { %362 = vmatmul.msk.f32.vlgmr.msrb.gmra.mxu3 %vm252_vm14, %v52_v43 }
 0x270   :  { %v273_v45 = vpop.f32.mrf.mxu3 }
 0x271   :  { %363 = vmatmul.msk.f32.vlgmr.msrb.gmra.mxu0 %vm64_vm0, %v273_v45 }
 0x2ee   :  { %v297_v47 = vpop.f32.mrf.mxu0 }
 0x2ef   :  { %v298_v48 = vadd.f32 %v297_v47, %v276_v46 }
 0x2f1   :  { %v300_v49 = vadd.f32 %v298_v48, %v298_v48 }
 0x2f3   :  { %v302_v50 = vsel %vm301_vm15, %v300_v49, 0.0 }
 0x2f4   :  { %303 = vadd.xlane.f32.xlu0 %v302_v50 }
 0x367   :  { %v304_v58 = vpop.xlane.xlu0 %303 }
 0x368   :  { %v312_v59 = vmul.f32 %v311_v57, %v304_v58 }
 0x36a   :  { %v313_v60 = vsub.f32 %v300_v49, %v312_v59 }
 0x36c   :  { %v314_v61 = vmul.f32 %v313_v60, %v313_v60 }
 0x36e   :  { %v315_v62 = vsel %vm301_vm15, %v314_v61, 0.0 }
 0x36f   :  { %316 = vadd.xlane.f32.xlu0 %v315_v62 }
 0x3e2   :  { %v317_v63 = vpop.xlane.xlu0 %316 }
 0x3e3   :  { %v318_v0 = vmul.f32 %v317_v63, %v311_v57 }
 0x3e5   :  { %v319_v1 = vadd.f32 1e-05, %v318_v0 }
 0x3e7   :  { %385 = vrsqrt.f32 %v319_v1  ;;  %vm326_vm2 = vweird.f32 %v319_v1 }
 0x3ed   :  { %v386_v2 = vpop.eup %385 }
 0x3ee   :  { %v321_v3 = vmul.f32 %v386_v2, %v319_v1  ;;  %vm327_vm0 = vweird.f32 %v386_v2 }
 0x3ef   :  { %vm328_vm3 = vmor %vm326_vm2, %vm327_vm0 }
 0x3f0   :  { %v322_v4 = vmul.f32 %v386_v2, %v321_v3 }
 0x3f2   :  { %v323_v5 = vmul.f32 0.5, %v322_v4 }
 0x3f4   :  { %v324_v6 = vsub.f32 1.5, %v323_v5 }
 0x3f6   :  { %v325_v7 = vmul.f32 %v386_v2, %v324_v6 }
 0x3f8   :  { %v329_v9 = vsel %vm328_vm3, %v386_v2, %v325_v7 }
 0x3f9   :  { %v330_v11 = vmul.f32 %v329_v9, %v313_v60 }
 0x3fb   :  { %v332_v13 = vmul.f32 %v331_v8, %v330_v11 }
 0x3fd   :  { %v334_v14 = vadd.f32 %v333_v12, %v332_v13 }
 0x3ff   :  { %335 = vst.msk [vmem:[#allocation5] sm:$0x3] %vm301_vm15, %v334_v14 }
 0x400   :  { %346 = dma.vmem_to_hbm [thread:$0]  %s342_s30, 32, %s344_s8, [#allocation3]  }
 0x401   :  { %425 = dma.done.wait [#allocation3], 32  }
 0x402   :  { %426 = vsyncadd [#allocation3], 4294967264 }
 0x403   :  { %351 = vsyncpa [#allocation3], 1 }
 0x404   :  { %352 = vsyncpa [#allocation4], 1 }

</bundles_post_ra>
